<compile_context>
chip_gen: v7x
topology: tpu7x:2x2x1
jax: 0.10.0
libtpu: 0.0.40
codegen_flags: <defaults>
</compile_context>

<pallas_src>
import jax
import jax.numpy as jnp
from jax.experimental import pallas as pl
from jax.experimental.pallas import tpu as pltpu


def linear_kernel(w_ref, b_ref, x_ref, o_ref):
    """out^T[c, :] = sum_f w[c, f] * x^T[f, :] + b[c]  (pure VPU, no MXU).

    w_ref: (C, F) f32 in SMEM (scalars), b_ref: (C,) f32 in SMEM,
    x_ref: (F, TILE_N) VMEM column tile (bf16 or f32),
    o_ref: (C, TILE_N) VMEM column tile, f32.
    """
    x = x_ref[...].astype(jnp.float32)          # upcast once; f32 FMA on all gens
    n_classes, n_features = w_ref.shape          # static (2, 4)
    rows = []
    for cc in range(n_classes):                  # fully unrolled: 8 broadcast-FMAs
        acc = x[0:1, :] * w_ref[cc, 0]
        for ff in range(1, n_features):
            acc = acc + x[ff:ff + 1, :] * w_ref[cc, ff]
        rows.append(acc + b_ref[cc])
    # Single lane-dense store of the whole (C, TILE_N) tile.
    o_ref[...] = jnp.concatenate(rows, axis=0).astype(o_ref.dtype)


def _round_up(v, m):
    return ((v + m - 1) // m) * m


def logistic_regression_forward(x, weight, bias, *, max_tile_cols=32768,
                                min_grid_steps=8, input_dtype=jnp.bfloat16):
    """Equivalent of LogisticRegression.forward (the nn.Linear only)."""
    n, f = x.shape
    c, f_w = weight.shape
    assert f == f_w, "feature dims must match"

    # Lane-dense: batch on the last (lane) axis. Wrapper transpose is layout
    # plumbing; the kernel then streams full-lane vregs.
    x_t = x.astype(input_dtype).T                   # (F, N)
    w_sm = weight.astype(jnp.float32)               # (C, F) -> SMEM scalars
    b_sm = bias.astype(jnp.float32).reshape(c)      # (C,)   -> SMEM scalars

    # Column tile: multiple of 128, as large as possible (amortize per-step
    # overhead, stay near HBM roofline), but keep >= min_grid_steps grid steps
    # when n is large so the "parallel" axis can be split over 2 TCs on v7x and
    # double-buffering has something to overlap.
    cand = max(128, _round_up(pl.cdiv(n, min_grid_steps), 128))
    cand = min(cand, max_tile_cols)
    # If one candidate tile covers everything, use the full (possibly unaligned)
    # extent; otherwise use the 128-multiple tile and let Pallas mask the ragged
    # last block (OOB reads feed only dropped writes -> correct).
    tile = n if cand >= n else cand
    grid = (pl.cdiv(n, tile),)

    out_t = pl.pallas_call(
        linear_kernel,
        out_shape=jax.ShapeDtypeStruct((c, n), jnp.float32),
        grid=grid,
        in_specs=[
            pl.BlockSpec(memory_space=pltpu.MemorySpace.SMEM),   # weight (C, F)
            pl.BlockSpec(memory_space=pltpu.MemorySpace.SMEM),   # bias (C,)
            pl.BlockSpec((f, tile), lambda i: (0, i)),           # x^T column tile
        ],
        out_specs=pl.BlockSpec((c, tile), lambda i: (0, i)),     # out^T column tile
        compiler_params=pltpu.CompilerParams(
            dimension_semantics=("parallel",),                    # megacore on v7x
        ),
    )(w_sm, b_sm, x_t)

    return out_t.T   # (N, C), matching nn.Linear output layout


# TODO(synk): fit()/sigmoid()/predict() are host-side training/inference helpers,
# not part of forward(); they are intentionally not implemented as kernels.


if __name__ == "__main__":
    # Module config from the PyTorch script.
    input_size = 4
    num_classes = 2

    key = jax.random.PRNGKey(0)
    kx1, kx2, kw, kb = jax.random.split(key, 4)

    # Deterministic nn.Linear-style init: U(-1/sqrt(in), 1/sqrt(in)).
    bound = 1.0 / (input_size ** 0.5)
    weight = jax.random.uniform(
        kw, (num_classes, input_size), jnp.float32, -bound, bound)
    bias = jax.random.uniform(
        kb, (num_classes,), jnp.float32, -bound, bound)

    # Case 1: batch like the spec's X[:100]; f32 input path -> exact parity with
    # the f32 reference. Single grid step (tile == n == 100, full-extent block).
    x_100 = jax.random.normal(kx1, (100, input_size), jnp.float32)
    out_100 = logistic_regression_forward(x_100, weight, bias,
                                          input_dtype=jnp.float32)
    jax.block_until_ready(out_100)
    ref_100 = x_100 @ weight.T + bias
    assert out_100.shape == (100, num_classes)
    assert jnp.allclose(out_100, ref_100, atol=1e-5, rtol=1e-5)

    # Case 2: larger batch, default bf16 input path. Exercises the multi-step
    # grid (8 steps of 128 columns) AND the ragged last block (1000 % 128 != 0)
    # with no pad / slice in the wrapper.
    n_big = 1000
    x_big = jax.random.normal(kx2, (n_big, input_size), jnp.float32)
    out_big = logistic_regression_forward(x_big, weight, bias)   # bf16 inputs
    jax.block_until_ready(out_big)
    x_big_bf = x_big.astype(jnp.bfloat16).astype(jnp.float32)
    ref_big = x_big_bf @ weight.T + bias
    assert out_big.shape == (n_big, num_classes)
    assert jnp.allclose(out_big, ref_big, atol=1e-4, rtol=1e-4)

    print("KERNEL_OK")
</pallas_src>

<mosaic_0001>
module attributes {stable_mosaic.version = 11 : i64} {
  func.func @linear_kernel(%arg0: i32, %arg1: memref<2x4xf32, #tpu.memory_space<smem>>, %arg2: memref<2xf32, #tpu.memory_space<smem>>, %arg3: memref<4x100xf32, #tpu.memory_space<vmem>>, %arg4: memref<2x100xf32, #tpu.memory_space<vmem>>) attributes {dimension_semantics = [#tpu.dimension_semantics<parallel>], iteration_bounds = array<i64: 1>, scalar_prefetch = 0 : i64, scratch_operands = 0 : i64, tpu.core_type = #tpu.core_type<tc>, window_params = [{transform_indices = @transform_0, window_bounds = array<i64: 2, 4>}, {transform_indices = @transform_1, window_bounds = array<i64: 2>}, {transform_indices = @transform_2, window_bounds = array<i64: 4, 100>}, {transform_indices = @transform_3, window_bounds = array<i64: 2, 100>}]} {
    %c0 = arith.constant 0 : index
    %c0_0 = arith.constant 0 : index
    %0 = vector.load %arg3[%c0, %c0_0] : memref<4x100xf32, #tpu.memory_space<vmem>>, vector<4x100xf32>
    %1 = vector.extract_strided_slice %0 {offsets = [0, 0], sizes = [1, 100], strides = [1, 1]} : vector<4x100xf32> to vector<1x100xf32>
    %c0_1 = arith.constant 0 : index
    %c0_2 = arith.constant 0 : index
    %2 = memref.load %arg1[%c0_1, %c0_2] : memref<2x4xf32, #tpu.memory_space<smem>>
    %3 = vector.broadcast %2 : f32 to vector<1x100xf32>
    %4 = arith.mulf %1, %3 : vector<1x100xf32>
    %5 = vector.extract_strided_slice %0 {offsets = [1, 0], sizes = [1, 100], strides = [1, 1]} : vector<4x100xf32> to vector<1x100xf32>
    %c0_3 = arith.constant 0 : index
    %c1 = arith.constant 1 : index
    %6 = memref.load %arg1[%c0_3, %c1] : memref<2x4xf32, #tpu.memory_space<smem>>
    %7 = vector.broadcast %6 : f32 to vector<1x100xf32>
    %8 = arith.mulf %5, %7 : vector<1x100xf32>
    %9 = arith.addf %4, %8 : vector<1x100xf32>
    %10 = vector.extract_strided_slice %0 {offsets = [2, 0], sizes = [1, 100], strides = [1, 1]} : vector<4x100xf32> to vector<1x100xf32>
    %c0_4 = arith.constant 0 : index
    %c2 = arith.constant 2 : index
    %11 = memref.load %arg1[%c0_4, %c2] : memref<2x4xf32, #tpu.memory_space<smem>>
    %12 = vector.broadcast %11 : f32 to vector<1x100xf32>
    %13 = arith.mulf %10, %12 : vector<1x100xf32>
    %14 = arith.addf %9, %13 : vector<1x100xf32>
    %15 = vector.extract_strided_slice %0 {offsets = [3, 0], sizes = [1, 100], strides = [1, 1]} : vector<4x100xf32> to vector<1x100xf32>
    %c0_5 = arith.constant 0 : index
    %c3 = arith.constant 3 : index
    %16 = memref.load %arg1[%c0_5, %c3] : memref<2x4xf32, #tpu.memory_space<smem>>
    %17 = vector.broadcast %16 : f32 to vector<1x100xf32>
    %18 = arith.mulf %15, %17 : vector<1x100xf32>
    %19 = arith.addf %14, %18 : vector<1x100xf32>
    %c0_6 = arith.constant 0 : index
    %20 = memref.load %arg2[%c0_6] : memref<2xf32, #tpu.memory_space<smem>>
    %21 = vector.broadcast %20 : f32 to vector<1x100xf32>
    %22 = arith.addf %19, %21 : vector<1x100xf32>
    %23 = vector.extract_strided_slice %0 {offsets = [0, 0], sizes = [1, 100], strides = [1, 1]} : vector<4x100xf32> to vector<1x100xf32>
    %c1_7 = arith.constant 1 : index
    %c0_8 = arith.constant 0 : index
    %24 = memref.load %arg1[%c1_7, %c0_8] : memref<2x4xf32, #tpu.memory_space<smem>>
    %25 = vector.broadcast %24 : f32 to vector<1x100xf32>
    %26 = arith.mulf %23, %25 : vector<1x100xf32>
    %27 = vector.extract_strided_slice %0 {offsets = [1, 0], sizes = [1, 100], strides = [1, 1]} : vector<4x100xf32> to vector<1x100xf32>
    %c1_9 = arith.constant 1 : index
    %c1_10 = arith.constant 1 : index
    %28 = memref.load %arg1[%c1_9, %c1_10] : memref<2x4xf32, #tpu.memory_space<smem>>
    %29 = vector.broadcast %28 : f32 to vector<1x100xf32>
    %30 = arith.mulf %27, %29 : vector<1x100xf32>
    %31 = arith.addf %26, %30 : vector<1x100xf32>
    %32 = vector.extract_strided_slice %0 {offsets = [2, 0], sizes = [1, 100], strides = [1, 1]} : vector<4x100xf32> to vector<1x100xf32>
    %c1_11 = arith.constant 1 : index
    %c2_12 = arith.constant 2 : index
    %33 = memref.load %arg1[%c1_11, %c2_12] : memref<2x4xf32, #tpu.memory_space<smem>>
    %34 = vector.broadcast %33 : f32 to vector<1x100xf32>
    %35 = arith.mulf %32, %34 : vector<1x100xf32>
    %36 = arith.addf %31, %35 : vector<1x100xf32>
    %37 = vector.extract_strided_slice %0 {offsets = [3, 0], sizes = [1, 100], strides = [1, 1]} : vector<4x100xf32> to vector<1x100xf32>
    %c1_13 = arith.constant 1 : index
    %c3_14 = arith.constant 3 : index
    %38 = memref.load %arg1[%c1_13, %c3_14] : memref<2x4xf32, #tpu.memory_space<smem>>
    %39 = vector.broadcast %38 : f32 to vector<1x100xf32>
    %40 = arith.mulf %37, %39 : vector<1x100xf32>
    %41 = arith.addf %36, %40 : vector<1x100xf32>
    %c1_15 = arith.constant 1 : index
    %42 = memref.load %arg2[%c1_15] : memref<2xf32, #tpu.memory_space<smem>>
    %43 = vector.broadcast %42 : f32 to vector<1x100xf32>
    %44 = arith.addf %41, %43 : vector<1x100xf32>
    %45 = tpu.concatenate %22, %44 in 0 : vector<1x100xf32>, vector<1x100xf32> -> vector<2x100xf32>
    %c0_16 = arith.constant 0 : index
    %c0_17 = arith.constant 0 : index
    %46 = vector.load %arg4[%c0_16, %c0_17] : memref<2x100xf32, #tpu.memory_space<vmem>>, vector<2x100xf32>
    tpu.vector_store %arg4[%c0_16, %c0_17], %45 {strides = array<i32>} : memref<2x100xf32, #tpu.memory_space<vmem>>, vector<2x100xf32>,
    return
  }
  func.func @transform_0(%arg0: i32) -> (i32, i32) {
    %c0_i32 = arith.constant 0 : i32
    %c0_i32_0 = arith.constant 0 : i32
    %c0_i32_1 = arith.constant 0 : i32
    return %c0_i32, %c0_i32_0 : i32, i32
  }
  func.func @transform_1(%arg0: i32) -> i32 {
    %c0_i32 = arith.constant 0 : i32
    %c0_i32_0 = arith.constant 0 : i32
    return %c0_i32 : i32
  }
  func.func @transform_2(%arg0: i32) -> (i32, i32) {
    %c0_i32 = arith.constant 0 : i32
    %c0_i32_0 = arith.constant 0 : i32
    return %c0_i32, %arg0 : i32, i32
  }
  func.func @transform_3(%arg0: i32) -> (i32, i32) {
    %c0_i32 = arith.constant 0 : i32
    %c0_i32_0 = arith.constant 0 : i32
    return %c0_i32, %arg0 : i32, i32
  }
}

</mosaic_0001>

<bundles_post_ra>
// kernel: tpu_custom_call.1
= control target key start
LH: loop header
LB: loop body
LE: loop exit
PB: predicated region body
PF: predicated region fallthrough
CT: control target
= control target key end

     0   :  { %8 = vsyncpa [#allocation4], 0  ;;  %s230_s0 = inlined_call_operand.hbm [shape: f32[2,4], index: 0, kind: input, shape index: {}]   ;;  %s231_s1 = inlined_call_operand.vmem [shape: f32[2], index: 1, kind: input, shape index: {}]   ;;  %s232_s2 = inlined_call_operand.vmem [shape: f32[4,100], index: 2, kind: input, shape index: {}]   ;;  %s233_s3 = inlined_call_operand.hbm [shape: f32[2,100], index: 3, kind: output, shape index: {}]  }
   0x1   :  { %9 = vsyncpa [#allocation5], 0 }
   0x2   :  { %10 = vsyncpa [#allocation3], 0  ;;  %s25_s14 = sshll.u32 %s231_s1, 4  ;;  %s127_s17 = scalar_lea.hbm %s230_s0, 32  ;;  %s26_s14 = int_to_ptr.vmem [resolvable:$true] %s25_s14 }
   0x3   :  { %p128_p0 = scmp.ne.s32.totalorder %s230_s0, %s127_s17  ;;  %p131_p1 = scmp.lt.u32.totalorder %s127_s17, %s230_s0 }
   0x5   :  { %p133_p2 = pnand %p131_p1, %p128_p0 }
   0x7   :  { %136 = shalt.err (!%p133_p2)
}
   0x8   :  { %s177_s22 = smov [#allocation2]   ;;  %s137_s1 = scalar_lea.vmem %s26_s14, 16 }
   0x9   :  { %18 = dma.hbm_to_smem %s230_s0, 32, %s177_s22, [#allocation4]  }
   0xa   :  { %p138_p3 = scmp.ne.s32.totalorder %s26_s14, %s137_s1  ;;  %p142_p4 = scmp.lt.s32.totalorder %s26_s14, %s26_s14 }
   0xb   :  { %p143_p5 = scmp.lt.s32.totalorder %s137_s1, %s137_s1 }
   0xd   :  { %p144_p6 = por %p143_p5, %p142_p4 }
   0xf   :  { %p145_p7 = pnand %p144_p6, %p138_p3 }
  0x11   :  { %148 = shalt.err (!%p145_p7)
}
  0x12   :  { %s178_s25 = smov [#allocation6]  }
  0x13   :  { %28 = dma.vmem_to_smem %s26_s14, 16, %s178_s25, [#allocation5]  }
  0x14   :  { %171 = dma.done.wait [#allocation4], 32  }
  0x15   :  { %172 = vsyncadd [#allocation4], 4294967264 }
  0x16   :  { %173 = dma.done.wait [#allocation5], 16  }
  0x17   :  { %174 = vsyncadd [#allocation5], 4294967280 }
  0x18   :  { %37 = sfence }
  0x19   :  { %s39_s26 = sld [smem:[#allocation2]]  ;;  %s116_s27 = sld [smem:[#allocation2 + $0x1]]  ;;  %v38_v0 = vld [vmem:[%s232_s2] sm:$0xf]  ;;  %vm96_vm0 = vcmask 1040384   ;;  %vm98_vm1 = vcmask 812032  }
  0x1a   :  { %s117_s28 = sld [smem:[#allocation2 + $0x2]]  ;;  %s118_s29 = sld [smem:[#allocation2 + $0x3]] }
  0x1b   :  { %s119_s0 = sld [smem:[#allocation2 + $0x80]]  ;;  %s120_s30 = sld [smem:[#allocation2 + $0x81]] }
  0x1c   :  { %s121_s4 = sld [smem:[#allocation2 + $0x82]]  ;;  %s122_s5 = sld [smem:[#allocation2 + $0x83]] }
  0x1d   :  { %s63_s8 = sld [smem:[#allocation6]]  ;;  %s123_s9 = sld [smem:[#allocation6 + $0x1]] }
  0x1e   :  { %s179_s2 = smov [#allocation7]  }
  0x1f   :  { %v40_v1 = vstv %s39_s26  ;;  %v43_v2 = vstv %s116_s27  ;;  %s106_s10 = sshll.u32 %s179_s2, 4  ;;  %s107_s10 = int_to_ptr.vmem [resolvable:$true] %s106_s10 }
  0x20   :  { %v41_v3 = vmul.f32 %v40_v1, %v38_v0  ;;  %v44_v4 = vmul.f32 %v43_v2, %v38_v0  ;;  %v50_v5 = vstv %s117_s28  ;;  %v57_v6 = vstv %s118_s29  ;;  %s149_s11 = scalar_lea.vmem %s107_s10, 32  ;;  %p154_p9 = scmp.lt.s32.totalorder %s107_s10, %s107_s10 }
  0x21   :  { %v51_v7 = vmul.f32 %v50_v5, %v38_v0  ;;  %v58_v8 = vmul.f32 %v57_v6, %v38_v0  ;;  %v67_v9 = vstv %s119_s0  ;;  %v70_v11 = vstv %s120_s30  ;;  %p150_p8 = scmp.ne.s32.totalorder %s107_s10, %s149_s11  ;;  %p155_p10 = scmp.lt.s32.totalorder %s149_s11, %s149_s11 }
  0x22   :  { %v46_v10 = vrot.slane %v44_v4, 1  ;;  %v77_v12 = vstv %s121_s4  ;;  %v68_v14 = vmul.f32 %v67_v9, %v38_v0  ;;  %v71_v15 = vmul.f32 %v70_v11, %v38_v0 }
  0x23   :  { %v53_v13 = vrot.slane %v51_v7, 2  ;;  %v78_v16 = vmul.f32 %v77_v12, %v38_v0  ;;  %v84_v18 = vstv %s122_s5  ;;  %v60_v19 = vrot.slane %v58_v8, 3  ;;  %p156_p11 = por %p155_p10, %p154_p9 }
  0x24   :  { %v48_v17 = vadd.f32 %v46_v10, %v41_v3  ;;  %v73_v20 = vrot.slane %v71_v15, 1  ;;  %v85_v22 = vmul.f32 %v84_v18, %v38_v0  ;;  %v64_v28 = vstv %s63_s8 }
  0x25   :  { %v80_v21 = vrot.slane %v78_v16, 2  ;;  %v91_v29 = vstv %s123_s9  ;;  %p157_p12 = pnand %p156_p11, %p150_p8 }
  0x26   :  { %v55_v23 = vadd.f32 %v53_v13, %v48_v17  ;;  %v75_v24 = vadd.f32 %v73_v20, %v68_v14  ;;  %v87_v25 = vrot.slane %v85_v22, 3 }
  0x28   :  { %v62_v26 = vadd.f32 %v60_v19, %v55_v23  ;;  %v82_v27 = vadd.f32 %v80_v21, %v75_v24 }
  0x2a   :  { %v89_v30 = vadd.f32 %v87_v25, %v82_v27  ;;  %v65_v31 = vadd.f32 %v64_v28, %v62_v26 }
  0x2c   :  { %v92_v32 = vadd.f32 %v91_v29, %v89_v30 }
  0x2e   :  { %v94_v33 = vrot.slane %v92_v32, 7 }
  0x30   :  { %v97_v34 = vsel %vm96_vm0, %v65_v31, %v94_v33 }
  0x31   :  { %99 = vst.msk [vmem:[#allocation7] sm:$0x3] %vm98_vm1, %v97_v34 }
  0x32   :  { %160 = shalt.err (!%p157_p12)
}
  0x33   :  { %s161_s14 = scalar_lea.hbm %s233_s3, 32 }
  0x34   :  { %p162_p13 = scmp.ne.s32.totalorder %s233_s3, %s161_s14  ;;  %p165_p0 = scmp.lt.u32.totalorder %s161_s14, %s233_s3 }
  0x36   :  { %p167_p1 = pnand %p165_p0, %p162_p13 }
  0x38   :  { %170 = shalt.err (!%p167_p1)
}
  0x39   :  { %109 = dma.vmem_to_hbm [thread:$0]  %s107_s10, 32, %s233_s3, [#allocation3]  }
  0x3a   :  { %175 = dma.done.wait [#allocation3], 32  }
  0x3b   :  { %176 = vsyncadd [#allocation3], 4294967264 }
  0x3c   :  { %113 = vsyncpa [#allocation3], 1 }
  0x3d   :  { %114 = vsyncpa [#allocation4], 1 }
  0x3e   :  { %115 = vsyncpa [#allocation5], 1 }

</bundles_post_ra>
